<compile_context>
chip_gen: v7x
topology: tpu7x:2x2x1
jax: 0.10.0
libtpu: 0.0.40
codegen_flags: <defaults>
</compile_context>

<pallas_src>
import functools

import jax
import jax.numpy as jnp
import numpy as np
from jax.experimental import pallas as pl
from jax.experimental.pallas import tpu as pltpu

_LANE = 128
_TP_TARGET = 8192       # per-step point tile: ~12 MiB double-buffered VMEM at
                        # M=128 (f32 logits + bf16 targets) -> fits every gen,
                        # incl. v7x's smaller VMEM.
_PAD_LOGIT = -1.0e4     # tanh(x/2) saturates to exactly -1 -> sigmoid == 0 and
                        # bce == 0, so padded points contribute exactly 0.


def _criterion_kernel(map_ref, tgt_ref, ce_ref, dice_ref,
                      bce_acc, num_acc, den_acc, *, inv_p, inv_m):
    """grid = (B, n_p_tiles); one step = one (batch, point-tile) pair.

    map_ref : (M, TP) f32 logits        tgt_ref : (M, TP) bf16 targets {0,1}
    ce_ref, dice_ref : (1, 8, 128) f32 per-batch outputs (full-tile store).
    bce_acc : (M, 1) f32  sum of BCE terms          (persistent over P tiles)
    num_acc : (M, 1) f32  sum of sigmoid(x) * t     (dice numerator / 2)
    den_acc : (M, 1) f32  sum of sigmoid(x) + t     (dice denominator)
    """
    p_idx = pl.program_id(1)

    @pl.when(p_idx == 0)
    def _():
        bce_acc[...] = jnp.zeros_like(bce_acc)
        num_acc[...] = jnp.zeros_like(num_acc)
        den_acc[...] = jnp.zeros_like(den_acc)

    x = map_ref[...].astype(jnp.float32)
    t = tgt_ref[...].astype(jnp.float32)

    # Single-tanh formulation (2 EUP ops/elem instead of exp+log1p+recip):
    #   sigmoid(x)       = 0.5 + 0.5 * tanh(x/2)
    #   log1p(exp(-|x|)) = -log(sigmoid(|x|)) = -log(0.5 + 0.5*|tanh(x/2)|)
    h = jnp.tanh(x * 0.5)
    sig = 0.5 * h + 0.5
    sig_abs = 0.5 * jnp.abs(h) + 0.5
    bce = jnp.maximum(x, 0.0) - x * t - jnp.log(sig_abs)

    bce_acc[...] += jnp.sum(bce, axis=-1, keepdims=True)
    num_acc[...] += jnp.sum(sig * t, axis=-1, keepdims=True)
    den_acc[...] += jnp.sum(sig + t, axis=-1, keepdims=True)

    @pl.when(p_idx == pl.num_programs(1) - 1)
    def _():
        # sigmoid_ce_loss: mean over true points, sum over masks, / num_masks
        ce = jnp.sum(bce_acc[...]) * inv_p * inv_m
        # dice_loss
        dice = jnp.sum(
            1.0 - (2.0 * num_acc[...] + 1.0) / (den_acc[...] + 1.0)
        ) * inv_m
        ce_ref[...] = jnp.broadcast_to(ce, ce_ref.shape)
        dice_ref[...] = jnp.broadcast_to(dice, dice_ref.shape)


def _loss_masks_pallas(maps_bmp, tgts_bmp):
    """maps_bmp: f32[B, M, P] logits; tgts_bmp: bf16[B, M, P] {0,1} targets.

    Returns (loss_mask, loss_dice) scalars (summed over the batch).
    """
    B, M, P = maps_bmp.shape

    # lane-align and tile P; pad with a logit that contributes exactly zero.
    p_aligned = ((P + _LANE - 1) // _LANE) * _LANE
    tp = min(_TP_TARGET, p_aligned)
    p_pad = ((p_aligned + tp - 1) // tp) * tp
    if p_pad != P:
        maps_bmp = jnp.pad(maps_bmp, ((0, 0), (0, 0), (0, p_pad - P)),
                           constant_values=_PAD_LOGIT)
        tgts_bmp = jnp.pad(tgts_bmp, ((0, 0), (0, 0), (0, p_pad - P)),
                           constant_values=0)
    n_ptiles = p_pad // tp

    kernel = functools.partial(
        _criterion_kernel,
        inv_p=1.0 / float(P),   # true (un-padded) point count
        inv_m=1.0 / float(M),   # true (un-padded) matched-mask count
    )

    ce, dice = pl.pallas_call(
        kernel,
        out_shape=(
            jax.ShapeDtypeStruct((B, 8, 128), jnp.float32),
            jax.ShapeDtypeStruct((B, 8, 128), jnp.float32),
        ),
        grid_spec=pltpu.PrefetchScalarGridSpec(
            num_scalar_prefetch=0,
            grid=(B, n_ptiles),
            in_specs=[
                pl.BlockSpec((pl.Squeezed(), M, tp), lambda b, p: (b, 0, p)),
                pl.BlockSpec((pl.Squeezed(), M, tp), lambda b, p: (b, 0, p)),
            ],
            out_specs=[
                pl.BlockSpec((1, 8, 128), lambda b, p: (b, 0, 0)),
                pl.BlockSpec((1, 8, 128), lambda b, p: (b, 0, 0)),
            ],
            scratch_shapes=[
                pltpu.VMEM((M, 1), jnp.float32),   # bce partial sums
                pltpu.VMEM((M, 1), jnp.float32),   # sigmoid*target partials
                pltpu.VMEM((M, 1), jnp.float32),   # sigmoid+target partials
            ],
        ),
        compiler_params=pltpu.CompilerParams(
            # batch axis parallel (megacore; per-batch outputs => no race),
            # point axis is the reduction -> arbitrary, last in grid.
            dimension_semantics=("parallel", "arbitrary"),
            vmem_limit_bytes=48 * 1024 * 1024,
        ),
    )(maps_bmp, tgts_bmp)

    return jnp.sum(ce[:, 0, 0]), jnp.sum(dice[:, 0, 0])


class SetCriterionPallas:
    """JAX/Pallas port of Mask3D SetCriterion.forward (mask losses only)."""

    def __init__(self, num_classes, weight_dict, eos_coef, losses,
                 num_points, oversample_ratio, importance_sample_ratio,
                 class_weights, pad_targets=False):
        self.num_classes = num_classes - 1
        self.class_weights = class_weights
        self.weight_dict = weight_dict
        self.eos_coef = eos_coef
        self.losses = losses
        self.pad_targets = pad_targets  # TODO(synk): pad_targets F.pad branch not needed for demo shapes.
        self.num_points = num_points    # TODO(synk): num_points != -1 randperm subsampling not supported; -1 path only.
        self.oversample_ratio = oversample_ratio
        self.importance_sample_ratio = importance_sample_ratio

    def _matcher(self, outputs, targets, mask_type):
        # TODO(synk): Hungarian matching (scipy linear_sum_assignment) has no
        # Pallas equivalent; deterministic identity assignment used instead.
        B = outputs["pred_masks"].shape[0]
        Q = outputs["pred_masks"].shape[2]
        return [(jnp.arange(Q, dtype=jnp.int32), jnp.arange(Q, dtype=jnp.int32))
                for _ in range(B)]

    def loss_masks(self, outputs, targets, indices, mask_type):
        pred = outputs["pred_masks"]                            # [B, P, Q]
        map_ids = jnp.stack([mi for mi, _ in indices], axis=0)  # [B, M]
        tgt_ids = jnp.stack([ti for _, ti in indices], axis=0)  # [B, M]

        # Gather matched prediction columns & transpose to [B, M, P] with a
        # single vectorized op (no per-batch Python loop / extra HBM copies).
        # TODO(synk): could be folded into the kernel via scalar-prefetch +
        # pl.Element gather to avoid this HBM round trip entirely.
        maps_bmp = jnp.swapaxes(
            jnp.take_along_axis(pred, map_ids[:, None, :], axis=2), 1, 2)

        tgts = jnp.stack([t[mask_type] for t in targets], axis=0)    # [B, Mt, P]
        tgts_bmp = jnp.take_along_axis(tgts, tgt_ids[:, :, None], axis=1)
        tgts_bmp = tgts_bmp.astype(jnp.bfloat16)   # {0,1}: lossless, halves bytes

        loss_mask, loss_dice = _loss_masks_pallas(
            maps_bmp.astype(jnp.float32), tgts_bmp)
        return {"loss_mask": loss_mask, "loss_dice": loss_dice}

    def forward(self, outputs, targets, mask_type):
        outputs_without_aux = {k: v for k, v in outputs.items() if k != "aux_outputs"}
        indices = self._matcher(outputs_without_aux, targets, mask_type)
        losses = {}
        for _loss in self.losses:
            losses.update(self.loss_masks(outputs, targets, indices, mask_type))
        if "aux_outputs" in outputs:
            for i, aux_outputs in enumerate(outputs["aux_outputs"]):
                indices = self._matcher(aux_outputs, targets, mask_type)
                for _loss in self.losses:
                    l_dict = self.loss_masks(aux_outputs, targets, indices, mask_type)
                    l_dict = {k + f"_{i}": v for k, v in l_dict.items()}
                    losses.update(l_dict)
        return losses


# ----------------------------- pure-JAX reference -----------------------------
def _reference_losses(maps_bmp, tgts_bmp):
    x = maps_bmp.astype(jnp.float32)
    t = tgts_bmp.astype(jnp.float32)
    M = x.shape[1]
    bce = jnp.maximum(x, 0.0) - x * t + jnp.log1p(jnp.exp(-jnp.abs(x)))
    ce = jnp.sum(jnp.sum(jnp.mean(bce, axis=-1), axis=-1) / M)
    p = jax.nn.sigmoid(x)
    num = 2.0 * jnp.sum(p * t, axis=-1)
    den = jnp.sum(p, axis=-1) + jnp.sum(t, axis=-1)
    dice = jnp.sum(jnp.sum(1.0 - (num + 1.0) / (den + 1.0), axis=-1) / M)
    return ce, dice


if __name__ == "__main__":
    key = jax.random.PRNGKey(0)
    B, P, Q = 2, 256, 8   # batch, points, queries (== matched masks)

    k1, k2 = jax.random.split(key)
    pred_masks = jax.random.normal(k1, (B, P, Q), dtype=jnp.float32)      # logits
    gt_masks = (jax.random.uniform(k2, (B, Q, P)) > 0.5).astype(jnp.float32)

    outputs = {"pred_masks": pred_masks}
    targets = [{"masks": gt_masks[b]} for b in range(B)]

    criterion = SetCriterionPallas(
        num_classes=19, weight_dict={"loss_mask": 5.0, "loss_dice": 2.0},
        eos_coef=0.1, losses=["masks"], num_points=-1,
        oversample_ratio=3.0, importance_sample_ratio=0.75,
        class_weights=-1, pad_targets=False,
    )

    losses = criterion.forward(outputs, targets, mask_type="masks")
    jax.block_until_ready(losses)

    # correctness check against a pure-JAX reference of the PyTorch math
    maps_bmp = jnp.swapaxes(pred_masks, 1, 2)   # [B, M, P]
    ref_ce, ref_dice = _reference_losses(maps_bmp, gt_masks)
    np.testing.assert_allclose(np.asarray(losses["loss_mask"]), np.asarray(ref_ce),
                               rtol=2e-5, atol=1e-5)
    np.testing.assert_allclose(np.asarray(losses["loss_dice"]), np.asarray(ref_dice),
                               rtol=2e-5, atol=1e-5)

    print("KERNEL_OK")
</pallas_src>

<mosaic_0001>
module attributes {stable_mosaic.version = 11 : i64} {
  func.func @_criterion_kernel(%arg0: i32, %arg1: i32, %arg2: memref<1x8x256xf32, #tpu.memory_space<vmem>>, %arg3: memref<1x8x256xbf16, #tpu.memory_space<vmem>>, %arg4: memref<1x8x128xf32, #tpu.memory_space<vmem>>, %arg5: memref<1x8x128xf32, #tpu.memory_space<vmem>>, %arg6: memref<8x1xf32, #tpu.memory_space<vmem>>, %arg7: memref<8x1xf32, #tpu.memory_space<vmem>>, %arg8: memref<8x1xf32, #tpu.memory_space<vmem>>) attributes {dimension_semantics = [#tpu.dimension_semantics<parallel>, #tpu.dimension_semantics<arbitrary>], iteration_bounds = array<i64: 2, 1>, scalar_prefetch = 0 : i64, scratch_operands = 3 : i64, tpu.core_type = #tpu.core_type<tc>, window_params = [{transform_indices = @transform_0, window_bounds = array<i64: 1, 8, 256>}, {transform_indices = @transform_1, window_bounds = array<i64: 1, 8, 256>}, {transform_indices = @transform_2, window_bounds = array<i64: 1, 8, 128>}, {transform_indices = @transform_3, window_bounds = array<i64: 1, 8, 128>}]} {
    %c0_i32 = arith.constant 0 : i32
    %0 = arith.cmpi eq, %arg1, %c0_i32 : i32
    %1 = arith.extui %0 : i1 to i32
    %c0_i32_0 = arith.constant 0 : i32
    %2 = arith.cmpi ne, %1, %c0_i32_0 : i32
    scf.if %2 {
      %cst_28 = arith.constant 0.000000e+00 : f32
      %46 = vector.broadcast %cst_28 : f32 to vector<8x1xf32>
      %c0_29 = arith.constant 0 : index
      %c0_30 = arith.constant 0 : index
      %47 = vector.load %arg6[%c0_29, %c0_30] : memref<8x1xf32, #tpu.memory_space<vmem>>, vector<8x1xf32>
      tpu.vector_store %arg6[%c0_29, %c0_30], %46 {strides = array<i32>} : memref<8x1xf32, #tpu.memory_space<vmem>>, vector<8x1xf32>,
      %cst_31 = arith.constant 0.000000e+00 : f32
      %48 = vector.broadcast %cst_31 : f32 to vector<8x1xf32>
      %c0_32 = arith.constant 0 : index
      %c0_33 = arith.constant 0 : index
      %49 = vector.load %arg7[%c0_32, %c0_33] : memref<8x1xf32, #tpu.memory_space<vmem>>, vector<8x1xf32>
      tpu.vector_store %arg7[%c0_32, %c0_33], %48 {strides = array<i32>} : memref<8x1xf32, #tpu.memory_space<vmem>>, vector<8x1xf32>,
      %cst_34 = arith.constant 0.000000e+00 : f32
      %50 = vector.broadcast %cst_34 : f32 to vector<8x1xf32>
      %c0_35 = arith.constant 0 : index
      %c0_36 = arith.constant 0 : index
      %51 = vector.load %arg8[%c0_35, %c0_36] : memref<8x1xf32, #tpu.memory_space<vmem>>, vector<8x1xf32>
      tpu.vector_store %arg8[%c0_35, %c0_36], %50 {strides = array<i32>} : memref<8x1xf32, #tpu.memory_space<vmem>>, vector<8x1xf32>,
    } else {
    }
    %c0 = arith.constant 0 : index
    %c0_1 = arith.constant 0 : index
    %c0_2 = arith.constant 0 : index
    %3 = vector.load %arg2[%c0, %c0_1, %c0_2] : memref<1x8x256xf32, #tpu.memory_space<vmem>>, vector<1x8x256xf32>
    %4 = vector.shape_cast %3 : vector<1x8x256xf32> to vector<8x256xf32>
    %c0_3 = arith.constant 0 : index
    %c0_4 = arith.constant 0 : index
    %c0_5 = arith.constant 0 : index
    %5 = vector.load %arg3[%c0_3, %c0_4, %c0_5] : memref<1x8x256xbf16, #tpu.memory_space<vmem>>, vector<1x8x256xbf16>
    %6 = vector.shape_cast %5 : vector<1x8x256xbf16> to vector<8x256xbf16>
    %7 = arith.extf %6 : vector<8x256xbf16> to vector<8x256xf32>
    %cst = arith.constant 5.000000e-01 : f32
    %8 = vector.broadcast %cst : f32 to vector<8x256xf32>
    %9 = arith.mulf %4, %8 : vector<8x256xf32>
    %10 = math.tanh %9 : vector<8x256xf32>
    %cst_6 = arith.constant 5.000000e-01 : f32
    %11 = vector.broadcast %cst_6 : f32 to vector<8x256xf32>
    %12 = arith.mulf %11, %10 : vector<8x256xf32>
    %cst_7 = arith.constant 5.000000e-01 : f32
    %13 = vector.broadcast %cst_7 : f32 to vector<8x256xf32>
    %14 = arith.addf %12, %13 : vector<8x256xf32>
    %15 = math.absf %10 : vector<8x256xf32>
    %cst_8 = arith.constant 5.000000e-01 : f32
    %16 = vector.broadcast %cst_8 : f32 to vector<8x256xf32>
    %17 = arith.mulf %16, %15 : vector<8x256xf32>
    %cst_9 = arith.constant 5.000000e-01 : f32
    %18 = vector.broadcast %cst_9 : f32 to vector<8x256xf32>
    %19 = arith.addf %17, %18 : vector<8x256xf32>
    %cst_10 = arith.constant 0.000000e+00 : f32
    %20 = vector.broadcast %cst_10 : f32 to vector<8x256xf32>
    %21 = arith.maximumf %4, %20 : vector<8x256xf32>
    %22 = arith.mulf %4, %7 : vector<8x256xf32>
    %23 = arith.subf %21, %22 : vector<8x256xf32>
    %24 = math.log %19 : vector<8x256xf32>
    %25 = arith.subf %23, %24 : vector<8x256xf32>
    %c0_11 = arith.constant 0 : index
    %c0_12 = arith.constant 0 : index
    %26 = vector.load %arg6[%c0_11, %c0_12] : memref<8x1xf32, #tpu.memory_space<vmem>>, vector<8x1xf32>
    %cst_13 = arith.constant dense<0.000000e+00> : vector<8xf32>
    %27 = vector.multi_reduction <add>, %25, %cst_13 [1] : vector<8x256xf32> to vector<8xf32>
    %28 = vector.shape_cast %27 : vector<8xf32> to vector<8x1xf32>
    %29 = arith.addf %26, %28 : vector<8x1xf32>
    %c0_14 = arith.constant 0 : index
    %c0_15 = arith.constant 0 : index
    %30 = vector.load %arg6[%c0_14, %c0_15] : memref<8x1xf32, #tpu.memory_space<vmem>>, vector<8x1xf32>
    tpu.vector_store %arg6[%c0_14, %c0_15], %29 {strides = array<i32>} : memref<8x1xf32, #tpu.memory_space<vmem>>, vector<8x1xf32>,
    %c0_16 = arith.constant 0 : index
    %c0_17 = arith.constant 0 : index
    %31 = vector.load %arg7[%c0_16, %c0_17] : memref<8x1xf32, #tpu.memory_space<vmem>>, vector<8x1xf32>
    %32 = arith.mulf %14, %7 : vector<8x256xf32>
    %cst_18 = arith.constant dense<0.000000e+00> : vector<8xf32>
    %33 = vector.multi_reduction <add>, %32, %cst_18 [1] : vector<8x256xf32> to vector<8xf32>
    %34 = vector.shape_cast %33 : vector<8xf32> to vector<8x1xf32>
    %35 = arith.addf %31, %34 : vector<8x1xf32>
    %c0_19 = arith.constant 0 : index
    %c0_20 = arith.constant 0 : index
    %36 = vector.load %arg7[%c0_19, %c0_20] : memref<8x1xf32, #tpu.memory_space<vmem>>, vector<8x1xf32>
    tpu.vector_store %arg7[%c0_19, %c0_20], %35 {strides = array<i32>} : memref<8x1xf32, #tpu.memory_space<vmem>>, vector<8x1xf32>,
    %c0_21 = arith.constant 0 : index
    %c0_22 = arith.constant 0 : index
    %37 = vector.load %arg8[%c0_21, %c0_22] : memref<8x1xf32, #tpu.memory_space<vmem>>, vector<8x1xf32>
    %38 = arith.addf %14, %7 : vector<8x256xf32>
    %cst_23 = arith.constant dense<0.000000e+00> : vector<8xf32>
    %39 = vector.multi_reduction <add>, %38, %cst_23 [1] : vector<8x256xf32> to vector<8xf32>
    %40 = vector.shape_cast %39 : vector<8xf32> to vector<8x1xf32>
    %41 = arith.addf %37, %40 : vector<8x1xf32>
    %c0_24 = arith.constant 0 : index
    %c0_25 = arith.constant 0 : index
    %42 = vector.load %arg8[%c0_24, %c0_25] : memref<8x1xf32, #tpu.memory_space<vmem>>, vector<8x1xf32>
    tpu.vector_store %arg8[%c0_24, %c0_25], %41 {strides = array<i32>} : memref<8x1xf32, #tpu.memory_space<vmem>>, vector<8x1xf32>,
    %c0_i32_26 = arith.constant 0 : i32
    %43 = arith.cmpi eq, %arg1, %c0_i32_26 : i32
    %44 = arith.extui %43 : i1 to i32
    %c0_i32_27 = arith.constant 0 : i32
    %45 = arith.cmpi ne, %44, %c0_i32_27 : i32
    scf.if %45 {
      %c0_28 = arith.constant 0 : index
      %c0_29 = arith.constant 0 : index
      %46 = vector.load %arg6[%c0_28, %c0_29] : memref<8x1xf32, #tpu.memory_space<vmem>>, vector<8x1xf32>
      %47 = vector.shape_cast %46 : vector<8x1xf32> to vector<1x8x1xf32>
      %cst_30 = arith.constant dense<0.000000e+00> : vector<1xf32>
      %48 = vector.multi_reduction <add>, %47, %cst_30 [1, 2] : vector<1x8x1xf32> to vector<1xf32>
      %49 = vector.shape_cast %48 : vector<1xf32> to vector<1x1x1xf32>
      %50 = vector.extract %49[0, 0, 0] : f32 from vector<1x1x1xf32>
      %cst_31 = arith.constant 3.906250e-03 : f32
      %51 = arith.mulf %50, %cst_31 : f32
      %cst_32 = arith.constant 1.250000e-01 : f32
      %52 = arith.mulf %51, %cst_32 : f32
      %c0_33 = arith.constant 0 : index
      %c0_34 = arith.constant 0 : index
      %53 = vector.load %arg7[%c0_33, %c0_34] : memref<8x1xf32, #tpu.memory_space<vmem>>, vector<8x1xf32>
      %cst_35 = arith.constant 2.000000e+00 : f32
      %54 = vector.broadcast %cst_35 : f32 to vector<8x1xf32>
      %55 = arith.mulf %54, %53 : vector<8x1xf32>
      %cst_36 = arith.constant 1.000000e+00 : f32
      %56 = vector.broadcast %cst_36 : f32 to vector<8x1xf32>
      %57 = arith.addf %55, %56 : vector<8x1xf32>
      %c0_37 = arith.constant 0 : index
      %c0_38 = arith.constant 0 : index
      %58 = vector.load %arg8[%c0_37, %c0_38] : memref<8x1xf32, #tpu.memory_space<vmem>>, vector<8x1xf32>
      %cst_39 = arith.constant 1.000000e+00 : f32
      %59 = vector.broadcast %cst_39 : f32 to vector<8x1xf32>
      %60 = arith.addf %58, %59 : vector<8x1xf32>
      %61 = arith.divf %57, %60 : vector<8x1xf32>
      %cst_40 = arith.constant 1.000000e+00 : f32
      %62 = vector.broadcast %cst_40 : f32 to vector<8x1xf32>
      %63 = arith.subf %62, %61 : vector<8x1xf32>
      %64 = vector.shape_cast %63 : vector<8x1xf32> to vector<1x8x1xf32>
      %cst_41 = arith.constant dense<0.000000e+00> : vector<1xf32>
      %65 = vector.multi_reduction <add>, %64, %cst_41 [1, 2] : vector<1x8x1xf32> to vector<1xf32>
      %66 = vector.shape_cast %65 : vector<1xf32> to vector<1x1x1xf32>
      %67 = vector.extract %66[0, 0, 0] : f32 from vector<1x1x1xf32>
      %cst_42 = arith.constant 1.250000e-01 : f32
      %68 = arith.mulf %67, %cst_42 : f32
      %69 = vector.broadcast %52 : f32 to vector<1x8x128xf32>
      %c0_43 = arith.constant 0 : index
      %c0_44 = arith.constant 0 : index
      %c0_45 = arith.constant 0 : index
      %70 = vector.load %arg4[%c0_43, %c0_44, %c0_45] : memref<1x8x128xf32, #tpu.memory_space<vmem>>, vector<1x8x128xf32>
      tpu.vector_store %arg4[%c0_43, %c0_44, %c0_45], %69 {strides = array<i32>} : memref<1x8x128xf32, #tpu.memory_space<vmem>>, vector<1x8x128xf32>,
      %71 = vector.broadcast %68 : f32 to vector<1x8x128xf32>
      %c0_46 = arith.constant 0 : index
      %c0_47 = arith.constant 0 : index
      %c0_48 = arith.constant 0 : index
      %72 = vector.load %arg5[%c0_46, %c0_47, %c0_48] : memref<1x8x128xf32, #tpu.memory_space<vmem>>, vector<1x8x128xf32>
      tpu.vector_store %arg5[%c0_46, %c0_47, %c0_48], %71 {strides = array<i32>} : memref<1x8x128xf32, #tpu.memory_space<vmem>>, vector<1x8x128xf32>,
    } else {
    }
    return
  }
  func.func @transform_0(%arg0: i32, %arg1: i32) -> (i32, i32, i32) {
    %c0_i32 = arith.constant 0 : i32
    %c0_i32_0 = arith.constant 0 : i32
    return %arg0, %c0_i32, %arg1 : i32, i32, i32
  }
  func.func @transform_1(%arg0: i32, %arg1: i32) -> (i32, i32, i32) {
    %c0_i32 = arith.constant 0 : i32
    %c0_i32_0 = arith.constant 0 : i32
    return %arg0, %c0_i32, %arg1 : i32, i32, i32
  }
  func.func @transform_2(%arg0: i32, %arg1: i32) -> (i32, i32, i32) {
    %c0_i32 = arith.constant 0 : i32
    %c0_i32_0 = arith.constant 0 : i32
    %c0_i32_1 = arith.constant 0 : i32
    return %arg0, %c0_i32, %c0_i32_0 : i32, i32, i32
  }
  func.func @transform_3(%arg0: i32, %arg1: i32) -> (i32, i32, i32) {
    %c0_i32 = arith.constant 0 : i32
    %c0_i32_0 = arith.constant 0 : i32
    %c0_i32_1 = arith.constant 0 : i32
    return %arg0, %c0_i32, %c0_i32_0 : i32, i32, i32
  }
}

</mosaic_0001>

<bundles_post_ra>
// kernel: tpu_custom_call.1
= control target key start
LH: loop header
LB: loop body
LE: loop exit
PB: predicated region body
PF: predicated region fallthrough
CT: control target
= control target key end

     0   :  { %9 = vsyncpa [#allocation6], 0  ;;  %s1102_s0 = inlined_call_operand.hbm [shape: f32[2,8,256], index: 0, kind: input, shape index: {}]   ;;  %s1103_s1 = inlined_call_operand.hbm [shape: bf16[2,8,256], index: 1, kind: input, shape index: {}]   ;;  %s1104_s2 = inlined_call_operand.hbm [shape: f32[2,8,128], index: 2, kind: output, shape index: {0}]   ;;  %s1105_s3 = inlined_call_operand.hbm [shape: f32[2,8,128], index: 3, kind: output, shape index: {1}]  }
   0x1   :  { %11 = vsyncpa [#allocation6 + $0x1], 0 }
   0x2   :  { %12 = vsyncpa [#allocation9], 0 }
   0x3   :  { %14 = vsyncpa [#allocation9 + $0x1], 0 }
   0x4   :  { %15 = vsyncpa [#allocation7], 0 }
   0x5   :  { %17 = vsyncpa [#allocation7 + $0x1], 0 }
   0x6   :  { %18 = vsyncpa [#allocation12], 0 }
   0x7   :  { %20 = vsyncpa [#allocation12 + $0x1], 0  ;;  %s845_s12 = smov 0   ;;  %s847_s13 = smov 0  }
   0x8   :  { %s849_s14 = smov 0   ;;  %s851_s15 = smov 0  }
   0x9   :  { %s853_s16 = smov 0   ;;  %s855_s17 = smov 0  }
   0xa LB: > { %s530_s18 = sadd.s32 4294967295, %s818_s17   ;;  %s531_s19 = sadd.s32 4294967294, %s818_s17   ;;  %s818_s17 = sphi %s855_s17, %s26_s17   ;;  %s814_s16 = sphi %s853_s16, %s1125_s16   ;;  %s810_s15 = sphi %s851_s15, %s1124_s15   ;;  %s806_s14 = sphi %s849_s14, %s1123_s14   ;;  %s802_s13 = sphi %s847_s13, %s1122_s13   ;;  %s798_s12 = sphi %s845_s12, %s1121_s12  }
   0xb   : > { %s38_s20 = sadd.s32 1, %s814_s16  ;;  %s47_s21 = sadd.s32 1, %s806_s14 }
   0xc   : > { %p40_p0 = scmp.ge.s32.totalorder %s38_s20, 2  ;;  %p54_p1 = scmp.ne.s32.totalorder %s806_s14, %s802_s13 }
   0xd   : > { %p55_p2 = scmp.eq.s32.totalorder %s818_s17, 0  ;;  %p60_p3 = scmp.ne.s32.totalorder %s802_s13, %s798_s12 }
   0xe   : > { %s1127_s20 = smov (%p40_p0, %s38_s20), 0  ;;  %p61_p5 = scmp.eq.s32.totalorder %s530_s18, 0 }
   0xf   : > { %p886_p4 = por %p55_p2, %p54_p1  ;;  %s42_s23 = ssub.s32 %s814_s16, %s1127_s20 }
  0x10   : > { %p112_p6 = scmp.eq.s32.totalorder %s530_s18, 1  ;;  %p45_p7 = scmp.eq.s32.totalorder %s42_s23, 0 }
  0x11   : > { %p892_p8 = por %p61_p5, %p60_p3  ;;  %p118_p10 = scmp.eq.s32.totalorder %s531_s19, 1 }
  0x12   : > { %p896_p9 = por %p112_p6, %p54_p1  ;;  %p579_p13 = scmp.lt.s32.totalorder %s818_s17, 2 }
  0x13   : > { %s1109_s24 = scalar_select %p892_p8, 1, 0 }
  0x14   : > { %s1110_s25 = scalar_select %p896_p9, 1, 0 }
  0x15   : > { %s901_s26 = scalar_select %p45_p7, %s806_s14, %s47_s21  }
  0x16   : > { %p903_p11 = por %p118_p10, %p60_p3  ;;  %s910_s28 = sand.u32 1, %s806_s14  }
  0x17   : > { %s534_s29 = sshll.u32 %s910_s28, 4  ;;  %s551_s30 = sshll.u32 %s814_s16, 8 }
  0x18   : > { %s1111_s27 = scalar_select %p903_p11, 1, 0 }
  0x19   : > { %s917_s6 = scalar_lea.hbm %s1102_s0, %s551_s30  ;;  %s168_s7 = scalar_lea.vmem [#allocation5], %s534_s29 }
  0x1a   : > { %s178_s8 = sshll.u32 %s168_s7, 4  ;;  %p923_p0 = pnand %p579_p13, %p886_p4  ;;  %s919_s8 = int_to_ptr.vmem [resolvable:$true] %s178_s8 }
  0x1b   : > { %s165_s10 = scalar_lea.sflag [#allocation6], %s910_s28  ;;  %s640_s11 = scalar_lea.hbm %s917_s6, 256 }
  0x1c   : > { %p641_p3 = scmp.ne.s32.totalorder %s917_s6, %s640_s11  ;;  %p642_p5 = pneg %p923_p0 }
  0x1d   : > { %s645_s21 = scalar_lea.hbm %s1102_s0, 512  ;;  %p646_p4 = scmp.lt.u32.totalorder %s917_s6, %s1102_s0 }
  0x1e   : > { %p643_p6 = pnand %p642_p5, %p641_p3  ;;  %p647_p10 = scmp.lt.u32.totalorder %s645_s21, %s640_s11 }
  0x1f   : > { %p649_p12 = scmp.lt.u32.totalorder %s640_s11, %s917_s6 }
  0x20   : > { %p644_p7 = pneg %p643_p6  ;;  %p648_p13 = por %p647_p10, %p646_p4 }
  0x22   : > { %p650_p1 = por %p649_p12, %p648_p13 }
  0x24   : > { %p651_p2 = pnand %p650_p1, %p644_p7 }
  0x26   : > { %654 = shalt.err (!%p651_p2)
}
  0x27   : > { %s655_s29 = scalar_lea.vmem %s919_s8, 256  ;;  %s820_s30 = smov [#allocation5]  }
  0x28   : > { %p656_p3 = scmp.ne.s32.totalorder %s919_s8, %s655_s29  ;;  %s660_s4 = sshll.u32 %s820_s30, 4  ;;  %s661_s4 = int_to_ptr.vmem [resolvable:$false] %s660_s4 }
  0x29   : > { %s662_s5 = scalar_lea.vmem %s661_s4, 512  ;;  %p663_p9 = scmp.lt.s32.totalorder %s919_s8, %s661_s4 }
  0x2a   : > { %p658_p6 = pnand %p656_p3, %p642_p5  ;;  %p664_p4 = scmp.lt.s32.totalorder %s662_s5, %s655_s29 }
  0x2c   : > { %p659_p11 = pneg %p658_p6  ;;  %p665_p10 = por %p664_p4, %p663_p9 }
  0x2e   : > { %p666_p12 = pnand %p665_p10, %p659_p11 }
  0x30   : > { %669 = shalt.err (!%p666_p12)
}
  0x31   : > { %568 = dma.hbm_to_vmem [thread:$0]  (!%p923_p0), %s917_s6, 256, %s919_s8, %s165_s10  }
  0x32   : > { %p1113_p1 = scmp.lt.s32.totalorder %s818_s17, 3  ;;  %p1114_p2 = scmp.ge.s32.totalorder %s818_s17, 1 }
  0x33   : > { %s537_s11 = sshll.u32 %s910_s28, 3  ;;  %s552_s18 = sshll.u32 %s814_s16, 7 }
  0x34   : > { %p959_p7 = pnand %p1114_p2, %p1113_p1  ;;  %s968_s22 = scalar_lea.hbm %s1103_s1, %s552_s18 }
  0x35   : > { %s189_s23 = scalar_lea.vmem [#allocation8], %s537_s11  ;;  %s186_s6 = scalar_lea.sflag [#allocation9], %s910_s28 }
  0x36   : > { %s1115_s7 = scalar_select %p959_p7, 1, 0 }
  0x37   : > { %s199_s29 = sshll.u32 %s189_s23, 4  ;;  %s670_s8 = scalar_lea.hbm %s968_s22, 128  ;;  %s200_s29 = int_to_ptr.vmem [resolvable:$true] %s199_s29 }
  0x38   : > { %p671_p9 = scmp.ne.s32.totalorder %s968_s22, %s670_s8  ;;  %s675_s4 = scalar_lea.hbm %s1103_s1, 256 }
  0x39   : > { %p676_p3 = scmp.lt.u32.totalorder %s968_s22, %s1103_s1  ;;  %p677_p6 = scmp.lt.u32.totalorder %s675_s4, %s670_s8 }
  0x3a   : > { %p673_p11 = pnand %p671_p9, %p642_p5  ;;  %p679_p10 = scmp.lt.u32.totalorder %s670_s8, %s968_s22 }
  0x3b   : > { %p678_p4 = por %p677_p6, %p676_p3 }
  0x3c   : > { %p674_p13 = pneg %p673_p11 }
  0x3d   : > { %p680_p12 = por %p679_p10, %p678_p4 }
  0x3f   : > { %p681_p1 = pnand %p680_p12, %p674_p13 }
  0x41   : > { %684 = shalt.err (!%p681_p1)
}
  0x42   : > { %s685_s28 = scalar_lea.vmem %s200_s29, 128  ;;  %s821_s11 = smov [#allocation8]  }
  0x43   : > { %p686_p2 = scmp.ne.s32.totalorder %s200_s29, %s685_s28  ;;  %s690_s19 = sshll.u32 %s821_s11, 4  ;;  %s691_s19 = int_to_ptr.vmem [resolvable:$false] %s690_s19 }
  0x44   : > { %s692_s21 = scalar_lea.vmem %s691_s19, 256  ;;  %p693_p8 = scmp.lt.s32.totalorder %s200_s29, %s691_s19 }
  0x45   : > { %p688_p9 = pnand %p686_p2, %p642_p5  ;;  %p694_p7 = scmp.lt.s32.totalorder %s692_s21, %s685_s28 }
  0x47   : > { %p689_p11 = pneg %p688_p9  ;;  %p695_p3 = por %p694_p7, %p693_p8 }
  0x49   : > { %p696_p6 = pnand %p695_p3, %p689_p11 }
  0x4b   : > { %699 = shalt.err (!%p696_p6)
}
  0x4c   : > { %571 = dma.hbm_to_vmem [thread:$0]  (!%p923_p0), %s968_s22, 128, %s200_s29, %s186_s6  }
  0x4d   : > { %p1116_p13 = scmp.ne.s32.totalorder %s1115_s7, 0 }
  0x4e   : > { %s993_s23 = sand.u32 (!%p1116_p13), 1, %s802_s13   ;;  %p1117_p5 = scmp.ne.s32.totalorder (!%p1116_p13), %s1109_s24, 0 }
  0x4f   : > { %208 = sbr.rel (%p1116_p13) target bundleno = 533 (0x215), region = 28  ;;  %s541_s8 = sshll.u32 (!%p1116_p13), %s993_s23, 4 }
  0x50   : > { %s211_s10 = scalar_lea.sflag (!%p1116_p13), [#allocation6], %s993_s23  ;;  %s214_s30 = scalar_lea.vmem (!%p1116_p13), [#allocation5], %s541_s8 }
  0x56   : > { %781 = dma.done.wait (%p1117_p5), %s211_s10, 256  }
  0x57   : > { %783 = vsyncadd (%p1117_p5), %s211_s10, 4294967040  ;;  %s1002_s9 = sshll.u32 %s993_s23, 3  ;;  %s220_s7 = scalar_lea.sflag [#allocation9], %s993_s23 }
  0x58   : > { %s223_s22 = scalar_lea.vmem [#allocation8], %s1002_s9 }
  0x59   : > { %785 = dma.done.wait (%p1117_p5), %s220_s7, 128  }
  0x5a   : > { %787 = vsyncadd (%p1117_p5), %s220_s7, 4294967168  ;;  %vm262_vm0 = vcmask 7168   ;;  %v822_v0 = vmov 0.0   ;;  %v266_v1 = vld [vmem:[%s214_s30] sm:$0xff]  ;;  %v267_v2 = vld [vmem:[%s214_s30 + $0x8] sm:$0xff]  ;;  %s255_s24 = scalar_lea.vmem [#allocation11], %s1002_s9 }
  0x5b   : > { %265 = vst.msk [vmem:[#allocation4] sm:$0xff] %vm262_vm0, %v822_v0  ;;  %263 = vst.msk [vmem:[#allocation2] sm:$0xff] %vm262_vm0, %v822_v0  ;;  %v271_v3 = vmul.f32 0.5, %v266_v1  ;;  %v272_v4 = vmul.f32 0.5, %v267_v2  ;;  %v268_v5 = vld [vmem:[%s223_s22] sm:$0xff]  ;;  %v285_v26 = vmax.f32 %v266_v1, 0.0 }
  0x5c   : > { %264 = vst.msk [vmem:[#allocation3] sm:$0xff] %vm262_vm0, %v822_v0  ;;  %v269_v8 = vunpack.c.l.bf16 %v268_v5  ;;  %v270_v11 = vunpack.c.h.bf16 %v268_v5  ;;  %v286_v28 = vmax.f32 %v267_v2, 0.0  ;;  %s391_s29 = sshll.u32 %s255_s24, 4  ;;  %s547_s6 = sshll.u32 %s810_s15, 7  ;;  %s1033_s29 = int_to_ptr.vmem [resolvable:$true] %s391_s29 }
  0x5d   : > { %630 = vtanh.f32 %v271_v3  ;;  %s248_s18 = scalar_lea.vmem [#allocation10], %s1002_s9  ;;  %s1024_s8 = scalar_lea.hbm %s1104_s2, %s547_s6 }
  0x5e   : > { %632 = vtanh.f32 %v272_v4  ;;  %v287_v27 = vmul.f32 %v269_v8, %v266_v1  ;;  %v288_v29 = vmul.f32 %v270_v11, %v267_v2  ;;  %s378_s28 = sshll.u32 %s248_s18, 4  ;;  %s1031_s9 = scalar_lea.hbm %s1105_s3, %s547_s6  ;;  %s1026_s28 = int_to_ptr.vmem [resolvable:$true] %s378_s28 }
  0x5f   : > { %s360_s22 = scalar_lea.sflag [#allocation7], %s993_s23  ;;  %p1118_p0 = scmp.ne.s32.totalorder %s1110_s25, 0 }
  0x60   : > { %v289_v30 = vsub.f32 %v285_v26, %v287_v27  ;;  %v290_v32 = vsub.f32 %v286_v28, %v288_v29 }
  0x62   : > { %v312_v39 = vld [vmem:[#allocation4] sm:$0xff]  ;;  %v297_v47 = vld [vmem:[#allocation2] sm:$0xff] }
  0x63   : > { %v304_v42 = vld [vmem:[#allocation3] sm:$0xff] }
  0x67   : > { %v631_v6 = vpop.eup %630 }
  0x68   : > { %v633_v7 = vpop.eup %632  ;;  %v275_v9 = vmul.f32 0.5, %v631_v6  ;;  %v279_v10 = vand.u32 2147483647, %v631_v6 }
  0x69   : > { %v276_v12 = vmul.f32 0.5, %v633_v7  ;;  %v280_v13 = vand.u32 2147483647, %v633_v7 }
  0x6a   : > { %v277_v14 = vadd.f32 0.5, %v275_v9  ;;  %v281_v15 = vmul.f32 0.5, %v279_v10 }
  0x6b   : > { %v278_v16 = vadd.f32 0.5, %v276_v12  ;;  %v282_v17 = vmul.f32 0.5, %v280_v13 }
  0x6c   : > { %v313_v18 = vadd.f32 %v277_v14, %v269_v8  ;;  %v283_v19 = vadd.f32 0.5, %v281_v15  ;;  %v305_v21 = vmul.f32 %v277_v14, %v269_v8 }
  0x6d   : > { %v314_v20 = vadd.f32 %v278_v16, %v270_v11  ;;  %v306_v22 = vmul.f32 %v278_v16, %v270_v11  ;;  %v284_v23 = vadd.f32 0.5, %v282_v17 }
  0x6e   : > { %634 = vlog2.f32 %v283_v19 }
  0x6f   : > { %v315_v24 = vadd.f32 %v314_v20, %v313_v18  ;;  %636 = vlog2.f32 %v284_v23  ;;  %v307_v25 = vadd.f32 %v306_v22, %v305_v21 }
  0x71   : > { %316 = vadd.xlane.f32.xlu0 %v315_v24 }
  0x75   : > { %308 = vadd.xlane.f32.xlu0 %v307_v25 }
  0x78   : > { %v635_v31 = vpop.eup %634 }
  0x79   : > { %v637_v33 = vpop.eup %636  ;;  %v292_v34 = vmul.f32 0.6931472, %v635_v31 }
  0x7a   : > { %v294_v35 = vmul.f32 0.6931472, %v637_v33 }
  0x7b   : > { %v295_v36 = vsub.f32 %v289_v30, %v292_v34 }
  0x7c   : > { %v296_v37 = vsub.f32 %v290_v32, %v294_v35 }
  0x7e   : > { %v298_v38 = vadd.f32 %v296_v37, %v295_v36 }
  0x80   : > { %299 = vadd.xlane.f32.xlu1 %v298_v38 }
  0xfe   : > { %v317_v40 = vpop.xlane.xlu0 %316 }
  0xff   : > { %v318_v41 = vadd.f32 %v317_v40, %v312_v39 }
 0x101   : > { %319 = vst.msk [vmem:[#allocation4] sm:$0xff] %vm262_vm0, %v318_v41 }
 0x102   : > { %v309_v43 = vpop.xlane.xlu0 %308 }
 0x103   : > { %v310_v44 = vadd.f32 %v309_v43, %v304_v42 }
 0x105   : > { %311 = vst.msk [vmem:[#allocation3] sm:$0xff] %vm262_vm0, %v310_v44 }
 0x108   : > { %v339_v45 = vld [vmem:[#allocation4] sm:$0xff] }
 0x109   : > { %v340_v46 = vadd.f32 1.0, %v339_v45 }
 0x10b   : > { %638 = vrcp.f32 %v340_v46 }
 0x10c   : > { %v336_v48 = vld [vmem:[#allocation3] sm:$0xff] }
 0x10d   : > { %v300_v49 = vpop.xlane.xlu1 %299  ;;  %v337_v51 = vmul.f32 2.0, %v336_v48 }
 0x10e   : > { %v301_v50 = vadd.f32 %v300_v49, %v297_v47 }
 0x10f   : > { %v338_v52 = vadd.f32 1.0, %v337_v51 }
 0x110   : > { %303 = vst.msk [vmem:[#allocation2] sm:$0xff] %vm262_vm0, %v301_v50 }
 0x115   : > { %v639_v53 = vpop.eup %638 }
 0x116   : > { %v342_v54 = vmul.f32 %v639_v53, %v338_v52 }
 0x117   : > { %v323_v55 = vld [vmem:[#allocation2] sm:$0xff] }
 0x118   : > { %v324_v56 = vsel %vm262_vm0, %v323_v55, 0.0  ;;  %v343_v57 = vsub.f32 1.0, %v342_v54 }
 0x119   : > { %325 = vadd.xlane.f32.xlu1 %v324_v56 }
 0x11a   : > { %v344_v58 = vsel %vm262_vm0, %v343_v57, 0.0 }
 0x11b   : > { %345 = vadd.xlane.f32.xlu0 %v344_v58 }
 0x1a6   : > { %v326_v59 = vpop.xlane.xlu1 %325 }
 0x1a7   : > { %v327_v60 = vrot.slane %v326_v59, 4 }
 0x1a8   : > { %v346_v61 = vpop.xlane.xlu0 %345 }
 0x1a9   : > { %v328_v62 = vadd.f32 %v327_v60, %v326_v59  ;;  %v347_v63 = vrot.slane %v346_v61, 4 }
 0x1ab   : > { %v329_v0 = vrot.slane %v328_v62, 2  ;;  %v348_v1 = vadd.f32 %v347_v63, %v346_v61 }
 0x1ad   : > { %v349_v2 = vrot.slane %v348_v1, 2  ;;  %v330_v3 = vadd.f32 %v329_v0, %v328_v62 }
 0x1af   : > { %v350_v4 = vadd.f32 %v349_v2, %v348_v1  ;;  %v331_v5 = vrot.slane %v330_v3, 1 }
 0x1b1   : > { %v332_v6 = vadd.f32 %v331_v5, %v330_v3  ;;  %v351_v7 = vrot.slane %v350_v4, 1 }
 0x1b3   : > { %553 = vpush %v332_v6  ;;  %v352_v8 = vadd.f32 %v351_v7, %v350_v4 }
 0x1b5   : > { %555 = vpush %v352_v8 }
 0x1e4   : > { %s554_s4 = spop %553 }
 0x1e5   : > { %s334_s5 = smul.f32 0.00390625, %s554_s4  ;;  %s700_s4 = scalar_lea.vmem %s1026_s28, 128 }
 0x1e6   : > { %s556_s11 = spop %555  ;;  %p701_p8 = scmp.ne.s32.totalorder %s1026_s28, %s700_s4 }
 0x1e7   : > { %s335_s10 = smul.f32 0.125, %s334_s5  ;;  %s823_s5 = smov [#allocation10]  }
 0x1e8   : > { %s354_s30 = smul.f32 0.125, %s556_s11  ;;  %p702_p7 = pnand %p701_p8, %p1118_p0 }
 0x1e9   : > { %v355_v9 = vstv %s335_s10  ;;  %s704_s11 = sshll.u32 %s823_s5, 4  ;;  %s705_s11 = int_to_ptr.vmem [resolvable:$false] %s704_s11 }
 0x1ea   : > { %356 = vst [vmem:[%s248_s18] sm:$0xff] %v355_v9  ;;  %v357_v10 = vstv %s354_s30  ;;  %p703_p4 = pneg %p702_p7  ;;  %s706_s19 = scalar_lea.vmem %s705_s11, 256 }
 0x1eb   : > { %358 = vst [vmem:[%s255_s24] sm:$0xff] %v357_v10  ;;  %p707_p10 = scmp.lt.s32.totalorder %s1026_s28, %s705_s11  ;;  %p708_p12 = scmp.lt.s32.totalorder %s706_s19, %s700_s4 }
 0x1ed   : > { %p709_p1 = por %p708_p12, %p707_p10 }
 0x1ef   : > { %p710_p2 = pnand %p709_p1, %p703_p4 }
 0x1f1   : > { %713 = shalt.err (!%p710_p2)
}
 0x1f2   : > { %s714_s24 = scalar_lea.hbm %s1024_s8, 128  ;;  %s718_s21 = scalar_lea.hbm %s1104_s2, 256 }
 0x1f3   : > { %p715_p9 = scmp.ne.s32.totalorder %s1024_s8, %s714_s24  ;;  %p719_p6 = scmp.lt.u32.totalorder %s1024_s8, %s1104_s2 }
 0x1f4   : > { %p720_p13 = scmp.lt.u32.totalorder %s718_s21, %s714_s24  ;;  %p722_p8 = scmp.lt.u32.totalorder %s714_s24, %s1024_s8 }
 0x1f5   : > { %p716_p11 = pnand %p715_p9, %p1118_p0 }
 0x1f6   : > { %p721_p5 = por %p720_p13, %p719_p6 }
 0x1f7   : > { %p717_p3 = pneg %p716_p11 }
 0x1f8   : > { %p723_p7 = por %p722_p8, %p721_p5 }
 0x1fa   : > { %p724_p4 = pnand %p723_p7, %p717_p3 }
 0x1fc   : > { %727 = shalt.err (!%p724_p4)
}
 0x1fd   : > { %561 = dma.vmem_to_hbm [thread:$0]  (%p1118_p0), %s1026_s28, 128, %s1024_s8, %s360_s22  }
 0x1fe   : > { %s365_s15 = scalar_lea.sflag [#allocation12], %s993_s23  ;;  %s728_s7 = scalar_lea.vmem %s1033_s29, 128 }
 0x1ff   : > { %p729_p10 = scmp.ne.s32.totalorder %s1033_s29, %s728_s7  ;;  %s824_s4 = smov [#allocation11]  }
 0x200   : > { %s732_s5 = sshll.u32 %s824_s4, 4  ;;  %s733_s5 = int_to_ptr.vmem [resolvable:$false] %s732_s5 }
 0x201   : > { %p730_p12 = pnand %p729_p10, %p1118_p0  ;;  %s734_s11 = scalar_lea.vmem %s733_s5, 256 }
 0x202   : > { %p735_p2 = scmp.lt.s32.totalorder %s1033_s29, %s733_s5  ;;  %p736_p9 = scmp.lt.s32.totalorder %s734_s11, %s728_s7 }
 0x203   : > { %p731_p1 = pneg %p730_p12 }
 0x204   : > { %p737_p11 = por %p736_p9, %p735_p2 }
 0x206   : > { %p738_p3 = pnand %p737_p11, %p731_p1 }
 0x208   : > { %741 = shalt.err (!%p738_p3)
}
 0x209   : > { %s742_s23 = scalar_lea.hbm %s1031_s9, 128  ;;  %s746_s22 = scalar_lea.hbm %s1105_s3, 256 }
 0x20a   : > { %p743_p6 = scmp.ne.s32.totalorder %s1031_s9, %s742_s23  ;;  %p747_p8 = scmp.lt.u32.totalorder %s1031_s9, %s1105_s3 }
 0x20b   : > { %p748_p7 = scmp.lt.u32.totalorder %s746_s22, %s742_s23  ;;  %p750_p10 = scmp.lt.u32.totalorder %s742_s23, %s1031_s9 }
 0x20c   : > { %p744_p13 = pnand %p743_p6, %p1118_p0 }
 0x20d   : > { %p749_p4 = por %p748_p7, %p747_p8 }
 0x20e   : > { %p745_p5 = pneg %p744_p13 }
 0x20f   : > { %p751_p12 = por %p750_p10, %p749_p4 }
 0x211   : > { %p752_p1 = pnand %p751_p12, %p745_p5 }
 0x213   : > { %755 = shalt.err (!%p752_p1)
}
 0x214   : > { %562 = dma.vmem_to_hbm [thread:$0]  (%p1118_p0), %s1033_s29, 128, %s1031_s9, %s365_s15  }
 0x215 PF: > { %s403_s6 = sand.u32 1, %s798_s12   ;;  %p1119_p2 = scmp.ne.s32.totalorder %s1111_s27, 0 }
 0x216   : > { %p1120_p9 = scmp.ge.s32.totalorder %s818_s17, 2  ;;  %s404_s18 = scalar_lea.sflag [#allocation7], %s403_s6 }
 0x218   : > { %p573_p11 = pnand %p1120_p9, %p1119_p2 }
 0x21a   : > { %789 = dma.done.wait (!%p573_p11), %s404_s18, 128  }
 0x21b   : > { %791 = vsyncadd (!%p573_p11), %s404_s18, 4294967168  ;;  %s413_s21 = scalar_lea.sflag [#allocation12], %s403_s6 }
 0x21c   : > { %793 = dma.done.wait (!%p573_p11), %s413_s21, 128  }
 0x21d   : > { %795 = vsyncadd (!%p573_p11), %s413_s21, 4294967168  ;;  %s26_s17 = sadd.s32 1, %s818_s17   ;;  %s1121_s12 = smov %s802_s13 }
 0x21e   : > { %p23_p3 = scmp.ge.s32.totalorder %s26_s17, 4   ;;  %s1122_s13 = smov %s806_s14 }
 0x21f   : > { %s1123_s14 = smov %s901_s26  ;;  %s1124_s15 = smov %s814_s16 }
 0x220   : > { %s1125_s16 = smov %s1127_s20  ;;  %25 = sbr.rel (!%p23_p3) target bundleno = 10 (0xa), region = 111 }
 0x227   :  { %418 = vsyncpa [#allocation6], 1 }
 0x228   :  { %420 = vsyncpa [#allocation6 + $0x1], 1 }
 0x229   :  { %421 = vsyncpa [#allocation9], 1 }
 0x22a   :  { %423 = vsyncpa [#allocation9 + $0x1], 1 }
 0x22b   :  { %424 = vsyncpa [#allocation7], 1 }
 0x22c   :  { %426 = vsyncpa [#allocation7 + $0x1], 1 }
 0x22d   :  { %427 = vsyncpa [#allocation12], 1 }
 0x22e   :  { %429 = vsyncpa [#allocation12 + $0x1], 1 }

</bundles_post_ra>
